<compile_context>
chip_gen: v5e
topology: v5e:2x2
jax: 0.10.0
libtpu: 0.0.40
codegen_flags: <defaults>
</compile_context>

<pallas_src>
import math
import functools

import jax
import jax.numpy as jnp
import numpy as np
from jax.experimental import pallas as pl
from jax.experimental.pallas import tpu as pltpu


_NEG_INF = -1e30  # large finite negative: avoids inf-inf NaN hazards in online softmax


def _new_gelu(x):
    # exact NewGELU from the reference module
    return 0.5 * x * (1.0 + jnp.tanh(math.sqrt(2.0 / math.pi) * (x + 0.044715 * x ** 3)))


def _layernorm(x, w, b, eps=1e-5):
    mean = jnp.mean(x, axis=-1, keepdims=True)
    var = jnp.mean((x - mean) ** 2, axis=-1, keepdims=True)
    return (x - mean) * jax.lax.rsqrt(var + eps) * w + b


# --------------------------- kernel A: LN1 + QKV projection ---------------------------
def qkv_proj_kernel(x_ref, ln1w_ref, ln1b_ref, wqkv_ref, bqkv_ref,
                    q_ref, k_ref, v_ref, *, num_heads, hidden_size):
    H = hidden_size
    nh = num_heads
    hd = H // nh
    scale = 1.0 / math.sqrt(hd)

    x = x_ref[0].astype(jnp.float32)                                   # (TQ, H)
    h1 = _layernorm(x, ln1w_ref[...], ln1b_ref[...])
    qkv = jnp.dot(h1.astype(wqkv_ref.dtype), wqkv_ref[...],
                  preferred_element_type=jnp.float32) + bqkv_ref[...]  # (TQ, 3H) f32

    dt = q_ref.dtype
    # Head-major scatter via static lane slices; 1/sqrt(hd) folded into Q.
    # TODO(synk): for hd < 128 these are masked stores; pack 2-4 heads into a 128-wide
    #             lane group (or use hd >= 128 configs) to get full-lane stores.
    for h in range(nh):
        q_ref[0, h] = (qkv[:, h * hd:(h + 1) * hd] * scale).astype(dt)
        k_ref[0, h] = qkv[:, H + h * hd:H + (h + 1) * hd].astype(dt)
        v_ref[0, h] = qkv[:, 2 * H + h * hd:2 * H + (h + 1) * hd].astype(dt)


# -------- kernel B: causal flash attention + out-proj + LN2 + MLP + residuals ---------
def attn_block_kernel(x_ref, q_ref, k_ref, v_ref,
                      wo_ref, bo_ref, ln2w_ref, ln2b_ref,
                      wff1_ref, bff1_ref, wff2_ref, bff2_ref,
                      o_ref, m_scr, l_scr, acc_scr, *, q_tile):
    TQ = TK = q_tile
    qi = pl.program_id(1)
    ki = pl.program_id(2)

    @pl.when(ki == 0)
    def _init():
        m_scr[...] = jnp.full(m_scr.shape, _NEG_INF, jnp.float32)
        l_scr[...] = jnp.zeros(l_scr.shape, jnp.float32)
        acc_scr[...] = jnp.zeros(acc_scr.shape, jnp.float32)

    def _process(masked):
        q_blk = q_ref[0]                                               # (nh, TQ, hd)
        k_blk = k_ref[0]                                               # (nh, TK, hd)
        s = jnp.einsum('hqd,hkd->hqk', q_blk, k_blk,
                       preferred_element_type=jnp.float32)             # (nh, TQ, TK)
        if masked:  # diagonal tile only (TQ == TK and qi == ki)
            row = jax.lax.broadcasted_iota(jnp.int32, (TQ, TK), 0)
            col = jax.lax.broadcasted_iota(jnp.int32, (TQ, TK), 1)
            s = jnp.where((row >= col)[None, :, :], s, _NEG_INF)
        m_prev = m_scr[...]
        m_new = jnp.maximum(m_prev, jnp.max(s, axis=-1, keepdims=True))
        alpha = jnp.exp(m_prev - m_new)
        p = jnp.exp(s - m_new)
        l_scr[...] = alpha * l_scr[...] + jnp.sum(p, axis=-1, keepdims=True)
        v_blk = v_ref[0]
        acc_scr[...] = alpha * acc_scr[...] + jnp.einsum(
            'hqk,hkd->hqd', p.astype(v_blk.dtype), v_blk,
            preferred_element_type=jnp.float32)
        m_scr[...] = m_new

    @pl.when(ki < qi)      # interior KV tile: fully below the diagonal -> no mask work
    def _interior():
        _process(masked=False)

    @pl.when(ki == qi)     # diagonal KV tile: apply causal mask, then finish the block
    def _diag_and_epilogue():
        _process(masked=True)

        # Normalize (exact division), then fused head-merge + output projection:
        # w_out was reshaped host-side to (nh, hd, H); batched matmul + sum over heads.
        out_heads = (acc_scr[...] / l_scr[...]).astype(wo_ref.dtype)   # (nh, TQ, hd)
        attn = jnp.einsum('hqd,hdf->hqf', out_heads, wo_ref[...],
                          preferred_element_type=jnp.float32)          # (nh, TQ, H)
        attn = jnp.sum(attn, axis=0) + bo_ref[...]                     # (TQ, H)

        y = x_ref[0].astype(jnp.float32) + attn                        # residual 1

        h2 = _layernorm(y, ln2w_ref[...], ln2b_ref[...])
        ff = jnp.dot(h2.astype(wff1_ref.dtype), wff1_ref[...],
                     preferred_element_type=jnp.float32) + bff1_ref[...]
        ff = _new_gelu(ff)
        ff = jnp.dot(ff.astype(wff2_ref.dtype), wff2_ref[...],
                     preferred_element_type=jnp.float32) + bff2_ref[...]

        o_ref[0] = (y + ff).astype(o_ref.dtype)                        # residual 2
    # Steps with ki > qi are no-ops (clamped index map means no new DMA either).


# ------------------------------------ wrapper -----------------------------------------
def gpt_block(x, params, *, num_heads, q_tile=None,
              compute_dtype=jnp.bfloat16, vmem_limit_bytes=None):
    B, S, H = x.shape
    assert H % num_heads == 0
    nh = num_heads
    hd = H // nh
    if q_tile is None:
        # 256 fills the 256x256 MXU on v6e/v7x; fall back to 128 (v5e-native) or S.
        q_tile = 256 if S % 256 == 0 else (128 if S % 128 == 0 else S)
    assert S % q_tile == 0
    assert q_tile % 8 == 0 or q_tile == S
    nq = S // q_tile
    cd = compute_dtype

    # Matmul weights/biases in bf16 (f32 accumulation in-kernel); LayerNorm params f32.
    ln1w, ln1b = params["ln1_w"], params["ln1_b"]
    ln2w, ln2b = params["ln2_w"], params["ln2_b"]
    w_qkv = params["w_qkv"].astype(cd)
    b_qkv = params["b_qkv"].astype(cd)
    wo_r = params["w_out"].reshape(nh, hd, H).astype(cd)   # fused head-merge + out-proj
    b_out = params["b_out"].astype(cd)
    w_ff1 = params["w_ff1"].astype(cd)
    b_ff1 = params["b_ff1"].astype(cd)
    w_ff2 = params["w_ff2"].astype(cd)
    b_ff2 = params["b_ff2"].astype(cd)

    def _const_spec(arr, n_grid, single_buffer=False):
        zeros = (0,) * arr.ndim
        if n_grid == 2:
            idx = lambda b, q, _z=zeros: _z
        else:
            idx = lambda b, q, k, _z=zeros: _z
        if single_buffer:
            # Constant index map -> fetched once; double-buffering would only waste VMEM.
            return pl.BlockSpec(arr.shape, idx, pipeline_mode=pl.Buffered(1))
        return pl.BlockSpec(arr.shape, idx)

    # ---------------- pass 1: LN1 + QKV projection (tiled over seq) ----------------
    kern_a = functools.partial(qkv_proj_kernel, num_heads=nh, hidden_size=H)
    qkv_shape = jax.ShapeDtypeStruct((B, nh, S, hd), cd)
    q_hm, k_hm, v_hm = pl.pallas_call(
        kern_a,
        out_shape=(qkv_shape, qkv_shape, qkv_shape),
        grid_spec=pltpu.PrefetchScalarGridSpec(
            num_scalar_prefetch=0,
            grid=(B, nq),
            in_specs=[
                pl.BlockSpec((1, q_tile, H), lambda b, q: (b, q, 0)),
                _const_spec(ln1w, 2),
                _const_spec(ln1b, 2),
                _const_spec(w_qkv, 2, single_buffer=True),
                _const_spec(b_qkv, 2),
            ],
            out_specs=(
                pl.BlockSpec((1, nh, q_tile, hd), lambda b, q: (b, 0, q, 0)),
                pl.BlockSpec((1, nh, q_tile, hd), lambda b, q: (b, 0, q, 0)),
                pl.BlockSpec((1, nh, q_tile, hd), lambda b, q: (b, 0, q, 0)),
            )),
        compiler_params=pltpu.CompilerParams(
            dimension_semantics=("parallel", "parallel"),
            vmem_limit_bytes=vmem_limit_bytes),
    )(x, ln1w, ln1b, w_qkv, b_qkv)

    # ------ pass 2: causal flash attention + out-proj + LN2 + MLP + residuals ------
    kern_b = functools.partial(attn_block_kernel, q_tile=q_tile)

    def _kv_spec():
        # Clamp the kv block index above the diagonal: same block index as the previous
        # step -> no extra DMA; the kernel body skips compute for those steps anyway.
        return pl.BlockSpec((1, nh, q_tile, hd),
                            lambda b, q, k: (b, 0, jnp.minimum(k, q), 0))

    out = pl.pallas_call(
        kern_b,
        out_shape=jax.ShapeDtypeStruct((B, S, H), x.dtype),
        grid_spec=pltpu.PrefetchScalarGridSpec(
            num_scalar_prefetch=0,
            grid=(B, nq, nq),   # kv axis innermost; kv > q steps are (cheap) no-ops
            in_specs=[
                pl.BlockSpec((1, q_tile, H), lambda b, q, k: (b, q, 0)),          # x
                pl.BlockSpec((1, nh, q_tile, hd), lambda b, q, k: (b, 0, q, 0)),  # Q
                _kv_spec(),                                                       # K
                _kv_spec(),                                                       # V
                _const_spec(wo_r, 3, single_buffer=True),
                _const_spec(b_out, 3),
                _const_spec(ln2w, 3),
                _const_spec(ln2b, 3),
                # TODO(synk): for H >= ~2048 on v7x, tile w_ff1/w_ff2 over the 4H axis
                #             instead of keeping them fully resident.
                _const_spec(w_ff1, 3, single_buffer=True),
                _const_spec(b_ff1, 3),
                _const_spec(w_ff2, 3, single_buffer=True),
                _const_spec(b_ff2, 3),
            ],
            out_specs=pl.BlockSpec((1, q_tile, H), lambda b, q, k: (b, q, 0)),
            scratch_shapes=[
                pltpu.VMEM((nh, q_tile, 1), jnp.float32),    # m (online-softmax max)
                pltpu.VMEM((nh, q_tile, 1), jnp.float32),    # l (online-softmax denom)
                pltpu.VMEM((nh, q_tile, hd), jnp.float32),   # acc
            ]),
        compiler_params=pltpu.CompilerParams(
            # kv (reduction) axis must stay innermost + "arbitrary"; (b, q) tiles are
            # fully independent (scratch reset at kv==0) so both may feed v7x's 2 cores.
            dimension_semantics=("parallel", "parallel", "arbitrary"),
            vmem_limit_bytes=vmem_limit_bytes),
    )(x, q_hm, k_hm, v_hm, wo_r, b_out, ln2w, ln2b, w_ff1, b_ff1, w_ff2, b_ff2)
    return out


# ------------------------- pure-JAX reference (for checking) -------------------------
def gpt_block_ref(x, p, *, num_heads):
    def ln(t, w, b, eps=1e-5):
        mean = jnp.mean(t, axis=-1, keepdims=True)
        var = jnp.mean((t - mean) ** 2, axis=-1, keepdims=True)
        return (t - mean) / jnp.sqrt(var + eps) * w + b

    B, S, H = x.shape
    hd = H // num_heads
    h1 = ln(x, p["ln1_w"], p["ln1_b"])
    qkv = h1 @ p["w_qkv"] + p["b_qkv"]
    q, k, v = jnp.split(qkv, 3, axis=-1)
    q = q.reshape(B, S, num_heads, hd).transpose(0, 2, 1, 3)
    k = k.reshape(B, S, num_heads, hd).transpose(0, 2, 1, 3)
    v = v.reshape(B, S, num_heads, hd).transpose(0, 2, 1, 3)
    scores = jnp.einsum("bhqd,bhkd->bhqk", q, k) / math.sqrt(hd)
    mask = jnp.tril(jnp.ones((S, S), bool))
    scores = jnp.where(mask, scores, -jnp.inf)
    probs = jax.nn.softmax(scores, axis=-1)
    attn = jnp.einsum("bhqk,bhkd->bhqd", probs, v).transpose(0, 2, 1, 3).reshape(B, S, H)
    attn = attn @ p["w_out"] + p["b_out"]
    y = x + attn
    h2 = ln(y, p["ln2_w"], p["ln2_b"])
    ff = _new_gelu(h2 @ p["w_ff1"] + p["b_ff1"]) @ p["w_ff2"] + p["b_ff2"]
    return y + ff


# ------------------------------------- main -------------------------------------
if __name__ == "__main__":
    B, S, H, NH = 2, 16, 32, 4   # batch, seq (== max_length), hidden, heads
    TQ = 8                       # query/KV tile -> grid (B, 2, 2), exercises tiled path

    key = jax.random.PRNGKey(0)
    keys = jax.random.split(key, 8)
    f32 = jnp.float32

    params = {
        "ln1_w": jnp.ones((1, H), f32),
        "ln1_b": jnp.zeros((1, H), f32),
        "w_qkv": 0.02 * jax.random.normal(keys[0], (H, 3 * H), f32),
        "b_qkv": 0.01 * jax.random.normal(keys[1], (1, 3 * H), f32),
        "w_out": 0.02 * jax.random.normal(keys[2], (H, H), f32),
        "b_out": 0.01 * jax.random.normal(keys[3], (1, H), f32),
        "ln2_w": jnp.ones((1, H), f32),
        "ln2_b": jnp.zeros((1, H), f32),
        "w_ff1": 0.02 * jax.random.normal(keys[4], (H, 4 * H), f32),
        "b_ff1": 0.01 * jax.random.normal(keys[5], (1, 4 * H), f32),
        "w_ff2": 0.02 * jax.random.normal(keys[6], (4 * H, H), f32),
        "b_ff2": 0.01 * jax.random.normal(keys[7], (1, H), f32),
    }

    x = jax.random.normal(jax.random.PRNGKey(0), (B, S, H), f32)

    ref = jax.block_until_ready(gpt_block_ref(x, params, num_heads=NH))

    # f32-operand path: validates the kernel math at tight tolerance.
    out_f32 = jax.block_until_ready(
        gpt_block(x, params, num_heads=NH, q_tile=TQ, compute_dtype=jnp.float32))
    np.testing.assert_allclose(np.asarray(out_f32), np.asarray(ref), rtol=2e-3, atol=2e-3)

    # bf16-operand performance path (f32 accumulation): looser tolerance.
    out_bf16 = jax.block_until_ready(
        gpt_block(x, params, num_heads=NH, q_tile=TQ, compute_dtype=jnp.bfloat16))
    np.testing.assert_allclose(np.asarray(out_bf16), np.asarray(ref), rtol=2.5e-2, atol=2.5e-2)

    print("KERNEL_OK")
</pallas_src>

<mosaic_0001>
module attributes {stable_mosaic.version = 11 : i64} {
  func.func @qkv_proj_kernel(%arg0: i32, %arg1: i32, %arg2: memref<1x8x32xf32, #tpu.memory_space<vmem>>, %arg3: memref<1x32xf32, #tpu.memory_space<vmem>>, %arg4: memref<1x32xf32, #tpu.memory_space<vmem>>, %arg5: memref<32x96xf32, #tpu.memory_space<vmem>>, %arg6: memref<1x96xf32, #tpu.memory_space<vmem>>, %arg7: memref<1x4x8x8xf32, #tpu.memory_space<vmem>>, %arg8: memref<1x4x8x8xf32, #tpu.memory_space<vmem>>, %arg9: memref<1x4x8x8xf32, #tpu.memory_space<vmem>>) attributes {dimension_semantics = [#tpu.dimension_semantics<parallel>, #tpu.dimension_semantics<parallel>], iteration_bounds = array<i64: 2, 2>, scalar_prefetch = 0 : i64, scratch_operands = 0 : i64, tpu.core_type = #tpu.core_type<tc>, window_params = [{transform_indices = @transform_0, window_bounds = array<i64: 1, 8, 32>}, {pipeline_mode = #tpu.pipeline_mode<synchronous>, transform_indices = @transform_1, window_bounds = array<i64: 1, 32>}, {pipeline_mode = #tpu.pipeline_mode<synchronous>, transform_indices = @transform_2, window_bounds = array<i64: 1, 32>}, {pipeline_mode = #tpu.pipeline_mode<synchronous>, transform_indices = @transform_3, window_bounds = array<i64: 32, 96>}, {pipeline_mode = #tpu.pipeline_mode<synchronous>, transform_indices = @transform_4, window_bounds = array<i64: 1, 96>}, {transform_indices = @transform_5, window_bounds = array<i64: 1, 4, 8, 8>}, {transform_indices = @transform_6, window_bounds = array<i64: 1, 4, 8, 8>}, {transform_indices = @transform_7, window_bounds = array<i64: 1, 4, 8, 8>}]} {
    %c0 = arith.constant 0 : index
    %c0_0 = arith.constant 0 : index
    %c0_1 = arith.constant 0 : index
    %0 = vector.load %arg2[%c0, %c0_0, %c0_1] : memref<1x8x32xf32, #tpu.memory_space<vmem>>, vector<1x8x32xf32>
    %1 = vector.shape_cast %0 : vector<1x8x32xf32> to vector<8x32xf32>
    %c0_2 = arith.constant 0 : index
    %c0_3 = arith.constant 0 : index
    %2 = vector.load %arg3[%c0_2, %c0_3] : memref<1x32xf32, #tpu.memory_space<vmem>>, vector<1x32xf32>
    %c0_4 = arith.constant 0 : index
    %c0_5 = arith.constant 0 : index
    %3 = vector.load %arg4[%c0_4, %c0_5] : memref<1x32xf32, #tpu.memory_space<vmem>>, vector<1x32xf32>
    %cst = arith.constant dense<0.000000e+00> : vector<8xf32>
    %4 = vector.multi_reduction <add>, %1, %cst [1] : vector<8x32xf32> to vector<8xf32>
    %5 = vector.shape_cast %4 : vector<8xf32> to vector<8x1xf32>
    %cst_6 = arith.constant 3.200000e+01 : f32
    %6 = vector.broadcast %cst_6 : f32 to vector<8x1xf32>
    %7 = arith.divf %5, %6 : vector<8x1xf32>
    %8 = vector.broadcast %7 : vector<8x1xf32> to vector<8x32xf32>
    %9 = arith.subf %1, %8 : vector<8x32xf32>
    %10 = arith.mulf %9, %9 : vector<8x32xf32>
    %cst_7 = arith.constant dense<0.000000e+00> : vector<8xf32>
    %11 = vector.multi_reduction <add>, %10, %cst_7 [1] : vector<8x32xf32> to vector<8xf32>
    %12 = vector.shape_cast %11 : vector<8xf32> to vector<8x1xf32>
    %cst_8 = arith.constant 3.200000e+01 : f32
    %13 = vector.broadcast %cst_8 : f32 to vector<8x1xf32>
    %14 = arith.divf %12, %13 : vector<8x1xf32>
    %15 = vector.broadcast %7 : vector<8x1xf32> to vector<8x32xf32>
    %16 = arith.subf %1, %15 : vector<8x32xf32>
    %cst_9 = arith.constant 9.99999974E-6 : f32
    %17 = vector.broadcast %cst_9 : f32 to vector<8x1xf32>
    %18 = arith.addf %14, %17 : vector<8x1xf32>
    %19 = math.rsqrt %18 : vector<8x1xf32>
    %20 = vector.broadcast %19 : vector<8x1xf32> to vector<8x32xf32>
    %21 = arith.mulf %16, %20 : vector<8x32xf32>
    %22 = vector.broadcast %2 : vector<1x32xf32> to vector<8x32xf32>
    %23 = arith.mulf %21, %22 : vector<8x32xf32>
    %24 = vector.broadcast %3 : vector<1x32xf32> to vector<8x32xf32>
    %25 = arith.addf %23, %24 : vector<8x32xf32>
    %c0_10 = arith.constant 0 : index
    %c0_11 = arith.constant 0 : index
    %26 = vector.load %arg5[%c0_10, %c0_11] : memref<32x96xf32, #tpu.memory_space<vmem>>, vector<32x96xf32>
    %cst_12 = arith.constant dense<0.000000e+00> : vector<8x96xf32>
    %27 = tpu.matmul %25, %26, %cst_12 {dimension_numbers = #tpu.dot_dimension_numbers<[1], [0], [0], [1], [0, 0, 1, 1], [], []>} : vector<8x32xf32>, vector<32x96xf32>, vector<8x96xf32> -> vector<8x96xf32>
    %c0_13 = arith.constant 0 : index
    %c0_14 = arith.constant 0 : index
    %28 = vector.load %arg6[%c0_13, %c0_14] : memref<1x96xf32, #tpu.memory_space<vmem>>, vector<1x96xf32>
    %29 = vector.broadcast %28 : vector<1x96xf32> to vector<8x96xf32>
    %30 = arith.addf %27, %29 : vector<8x96xf32>
    %31 = vector.extract_strided_slice %30 {offsets = [0, 0], sizes = [8, 8], strides = [1, 1]} : vector<8x96xf32> to vector<8x8xf32>
    %cst_15 = arith.constant 0.353553385 : f32
    %32 = vector.broadcast %cst_15 : f32 to vector<8x8xf32>
    %33 = arith.mulf %31, %32 : vector<8x8xf32>
    %c0_16 = arith.constant 0 : index
    %c0_17 = arith.constant 0 : index
    %c0_18 = arith.constant 0 : index
    %c0_19 = arith.constant 0 : index
    %34 = vector.load %arg7[%c0_16, %c0_17, %c0_18, %c0_19] : memref<1x4x8x8xf32, #tpu.memory_space<vmem>>, vector<1x1x8x8xf32>
    %35 = vector.shape_cast %34 : vector<1x1x8x8xf32> to vector<8x8xf32>
    %36 = vector.shape_cast %33 : vector<8x8xf32> to vector<1x1x8x8xf32>
    tpu.vector_store %arg7[%c0_16, %c0_17, %c0_18, %c0_19], %36 {strides = array<i32>} : memref<1x4x8x8xf32, #tpu.memory_space<vmem>>, vector<1x1x8x8xf32>,
    %37 = vector.extract_strided_slice %30 {offsets = [0, 32], sizes = [8, 8], strides = [1, 1]} : vector<8x96xf32> to vector<8x8xf32>
    %c0_20 = arith.constant 0 : index
    %c0_21 = arith.constant 0 : index
    %c0_22 = arith.constant 0 : index
    %c0_23 = arith.constant 0 : index
    %38 = vector.load %arg8[%c0_20, %c0_21, %c0_22, %c0_23] : memref<1x4x8x8xf32, #tpu.memory_space<vmem>>, vector<1x1x8x8xf32>
    %39 = vector.shape_cast %38 : vector<1x1x8x8xf32> to vector<8x8xf32>
    %40 = vector.shape_cast %37 : vector<8x8xf32> to vector<1x1x8x8xf32>
    tpu.vector_store %arg8[%c0_20, %c0_21, %c0_22, %c0_23], %40 {strides = array<i32>} : memref<1x4x8x8xf32, #tpu.memory_space<vmem>>, vector<1x1x8x8xf32>,
    %41 = vector.extract_strided_slice %30 {offsets = [0, 64], sizes = [8, 8], strides = [1, 1]} : vector<8x96xf32> to vector<8x8xf32>
    %c0_24 = arith.constant 0 : index
    %c0_25 = arith.constant 0 : index
    %c0_26 = arith.constant 0 : index
    %c0_27 = arith.constant 0 : index
    %42 = vector.load %arg9[%c0_24, %c0_25, %c0_26, %c0_27] : memref<1x4x8x8xf32, #tpu.memory_space<vmem>>, vector<1x1x8x8xf32>
    %43 = vector.shape_cast %42 : vector<1x1x8x8xf32> to vector<8x8xf32>
    %44 = vector.shape_cast %41 : vector<8x8xf32> to vector<1x1x8x8xf32>
    tpu.vector_store %arg9[%c0_24, %c0_25, %c0_26, %c0_27], %44 {strides = array<i32>} : memref<1x4x8x8xf32, #tpu.memory_space<vmem>>, vector<1x1x8x8xf32>,
    %45 = vector.extract_strided_slice %30 {offsets = [0, 8], sizes = [8, 8], strides = [1, 1]} : vector<8x96xf32> to vector<8x8xf32>
    %cst_28 = arith.constant 0.353553385 : f32
    %46 = vector.broadcast %cst_28 : f32 to vector<8x8xf32>
    %47 = arith.mulf %45, %46 : vector<8x8xf32>
    %c0_29 = arith.constant 0 : index
    %c1 = arith.constant 1 : index
    %c0_30 = arith.constant 0 : index
    %c0_31 = arith.constant 0 : index
    %48 = vector.load %arg7[%c0_29, %c1, %c0_30, %c0_31] : memref<1x4x8x8xf32, #tpu.memory_space<vmem>>, vector<1x1x8x8xf32>
    %49 = vector.shape_cast %48 : vector<1x1x8x8xf32> to vector<8x8xf32>
    %50 = vector.shape_cast %47 : vector<8x8xf32> to vector<1x1x8x8xf32>
    tpu.vector_store %arg7[%c0_29, %c1, %c0_30, %c0_31], %50 {strides = array<i32>} : memref<1x4x8x8xf32, #tpu.memory_space<vmem>>, vector<1x1x8x8xf32>,
    %51 = vector.extract_strided_slice %30 {offsets = [0, 40], sizes = [8, 8], strides = [1, 1]} : vector<8x96xf32> to vector<8x8xf32>
    %c0_32 = arith.constant 0 : index
    %c1_33 = arith.constant 1 : index
    %c0_34 = arith.constant 0 : index
    %c0_35 = arith.constant 0 : index
    %52 = vector.load %arg8[%c0_32, %c1_33, %c0_34, %c0_35] : memref<1x4x8x8xf32, #tpu.memory_space<vmem>>, vector<1x1x8x8xf32>
    %53 = vector.shape_cast %52 : vector<1x1x8x8xf32> to vector<8x8xf32>
    %54 = vector.shape_cast %51 : vector<8x8xf32> to vector<1x1x8x8xf32>
    tpu.vector_store %arg8[%c0_32, %c1_33, %c0_34, %c0_35], %54 {strides = array<i32>} : memref<1x4x8x8xf32, #tpu.memory_space<vmem>>, vector<1x1x8x8xf32>,
    %55 = vector.extract_strided_slice %30 {offsets = [0, 72], sizes = [8, 8], strides = [1, 1]} : vector<8x96xf32> to vector<8x8xf32>
    %c0_36 = arith.constant 0 : index
    %c1_37 = arith.constant 1 : index
    %c0_38 = arith.constant 0 : index
    %c0_39 = arith.constant 0 : index
    %56 = vector.load %arg9[%c0_36, %c1_37, %c0_38, %c0_39] : memref<1x4x8x8xf32, #tpu.memory_space<vmem>>, vector<1x1x8x8xf32>
    %57 = vector.shape_cast %56 : vector<1x1x8x8xf32> to vector<8x8xf32>
    %58 = vector.shape_cast %55 : vector<8x8xf32> to vector<1x1x8x8xf32>
    tpu.vector_store %arg9[%c0_36, %c1_37, %c0_38, %c0_39], %58 {strides = array<i32>} : memref<1x4x8x8xf32, #tpu.memory_space<vmem>>, vector<1x1x8x8xf32>,
    %59 = vector.extract_strided_slice %30 {offsets = [0, 16], sizes = [8, 8], strides = [1, 1]} : vector<8x96xf32> to vector<8x8xf32>
    %cst_40 = arith.constant 0.353553385 : f32
    %60 = vector.broadcast %cst_40 : f32 to vector<8x8xf32>
    %61 = arith.mulf %59, %60 : vector<8x8xf32>
    %c0_41 = arith.constant 0 : index
    %c2 = arith.constant 2 : index
    %c0_42 = arith.constant 0 : index
    %c0_43 = arith.constant 0 : index
    %62 = vector.load %arg7[%c0_41, %c2, %c0_42, %c0_43] : memref<1x4x8x8xf32, #tpu.memory_space<vmem>>, vector<1x1x8x8xf32>
    %63 = vector.shape_cast %62 : vector<1x1x8x8xf32> to vector<8x8xf32>
    %64 = vector.shape_cast %61 : vector<8x8xf32> to vector<1x1x8x8xf32>
    tpu.vector_store %arg7[%c0_41, %c2, %c0_42, %c0_43], %64 {strides = array<i32>} : memref<1x4x8x8xf32, #tpu.memory_space<vmem>>, vector<1x1x8x8xf32>,
    %65 = vector.extract_strided_slice %30 {offsets = [0, 48], sizes = [8, 8], strides = [1, 1]} : vector<8x96xf32> to vector<8x8xf32>
    %c0_44 = arith.constant 0 : index
    %c2_45 = arith.constant 2 : index
    %c0_46 = arith.constant 0 : index
    %c0_47 = arith.constant 0 : index
    %66 = vector.load %arg8[%c0_44, %c2_45, %c0_46, %c0_47] : memref<1x4x8x8xf32, #tpu.memory_space<vmem>>, vector<1x1x8x8xf32>
    %67 = vector.shape_cast %66 : vector<1x1x8x8xf32> to vector<8x8xf32>
    %68 = vector.shape_cast %65 : vector<8x8xf32> to vector<1x1x8x8xf32>
    tpu.vector_store %arg8[%c0_44, %c2_45, %c0_46, %c0_47], %68 {strides = array<i32>} : memref<1x4x8x8xf32, #tpu.memory_space<vmem>>, vector<1x1x8x8xf32>,
    %69 = vector.extract_strided_slice %30 {offsets = [0, 80], sizes = [8, 8], strides = [1, 1]} : vector<8x96xf32> to vector<8x8xf32>
    %c0_48 = arith.constant 0 : index
    %c2_49 = arith.constant 2 : index
    %c0_50 = arith.constant 0 : index
    %c0_51 = arith.constant 0 : index
    %70 = vector.load %arg9[%c0_48, %c2_49, %c0_50, %c0_51] : memref<1x4x8x8xf32, #tpu.memory_space<vmem>>, vector<1x1x8x8xf32>
    %71 = vector.shape_cast %70 : vector<1x1x8x8xf32> to vector<8x8xf32>
    %72 = vector.shape_cast %69 : vector<8x8xf32> to vector<1x1x8x8xf32>
    tpu.vector_store %arg9[%c0_48, %c2_49, %c0_50, %c0_51], %72 {strides = array<i32>} : memref<1x4x8x8xf32, #tpu.memory_space<vmem>>, vector<1x1x8x8xf32>,
    %73 = vector.extract_strided_slice %30 {offsets = [0, 24], sizes = [8, 8], strides = [1, 1]} : vector<8x96xf32> to vector<8x8xf32>
    %cst_52 = arith.constant 0.353553385 : f32
    %74 = vector.broadcast %cst_52 : f32 to vector<8x8xf32>
    %75 = arith.mulf %73, %74 : vector<8x8xf32>
    %c0_53 = arith.constant 0 : index
    %c3 = arith.constant 3 : index
    %c0_54 = arith.constant 0 : index
    %c0_55 = arith.constant 0 : index
    %76 = vector.load %arg7[%c0_53, %c3, %c0_54, %c0_55] : memref<1x4x8x8xf32, #tpu.memory_space<vmem>>, vector<1x1x8x8xf32>
    %77 = vector.shape_cast %76 : vector<1x1x8x8xf32> to vector<8x8xf32>
    %78 = vector.shape_cast %75 : vector<8x8xf32> to vector<1x1x8x8xf32>
    tpu.vector_store %arg7[%c0_53, %c3, %c0_54, %c0_55], %78 {strides = array<i32>} : memref<1x4x8x8xf32, #tpu.memory_space<vmem>>, vector<1x1x8x8xf32>,
    %79 = vector.extract_strided_slice %30 {offsets = [0, 56], sizes = [8, 8], strides = [1, 1]} : vector<8x96xf32> to vector<8x8xf32>
    %c0_56 = arith.constant 0 : index
    %c3_57 = arith.constant 3 : index
    %c0_58 = arith.constant 0 : index
    %c0_59 = arith.constant 0 : index
    %80 = vector.load %arg8[%c0_56, %c3_57, %c0_58, %c0_59] : memref<1x4x8x8xf32, #tpu.memory_space<vmem>>, vector<1x1x8x8xf32>
    %81 = vector.shape_cast %80 : vector<1x1x8x8xf32> to vector<8x8xf32>
    %82 = vector.shape_cast %79 : vector<8x8xf32> to vector<1x1x8x8xf32>
    tpu.vector_store %arg8[%c0_56, %c3_57, %c0_58, %c0_59], %82 {strides = array<i32>} : memref<1x4x8x8xf32, #tpu.memory_space<vmem>>, vector<1x1x8x8xf32>,
    %83 = vector.extract_strided_slice %30 {offsets = [0, 88], sizes = [8, 8], strides = [1, 1]} : vector<8x96xf32> to vector<8x8xf32>
    %c0_60 = arith.constant 0 : index
    %c3_61 = arith.constant 3 : index
    %c0_62 = arith.constant 0 : index
    %c0_63 = arith.constant 0 : index
    %84 = vector.load %arg9[%c0_60, %c3_61, %c0_62, %c0_63] : memref<1x4x8x8xf32, #tpu.memory_space<vmem>>, vector<1x1x8x8xf32>
    %85 = vector.shape_cast %84 : vector<1x1x8x8xf32> to vector<8x8xf32>
    %86 = vector.shape_cast %83 : vector<8x8xf32> to vector<1x1x8x8xf32>
    tpu.vector_store %arg9[%c0_60, %c3_61, %c0_62, %c0_63], %86 {strides = array<i32>} : memref<1x4x8x8xf32, #tpu.memory_space<vmem>>, vector<1x1x8x8xf32>,
    return
  }
  func.func @transform_0(%arg0: i32, %arg1: i32) -> (i32, i32, i32) {
    %c0_i32 = arith.constant 0 : i32
    %c0_i32_0 = arith.constant 0 : i32
    return %arg0, %arg1, %c0_i32 : i32, i32, i32
  }
  func.func @transform_1(%arg0: i32, %arg1: i32) -> (i32, i32) {
    %c0_i32 = arith.constant 0 : i32
    %c0_i32_0 = arith.constant 0 : i32
    %c0_i32_1 = arith.constant 0 : i32
    return %c0_i32, %c0_i32_0 : i32, i32
  }
  func.func @transform_2(%arg0: i32, %arg1: i32) -> (i32, i32) {
    %c0_i32 = arith.constant 0 : i32
    %c0_i32_0 = arith.constant 0 : i32
    %c0_i32_1 = arith.constant 0 : i32
    return %c0_i32, %c0_i32_0 : i32, i32
  }
  func.func @transform_3(%arg0: i32, %arg1: i32) -> (i32, i32) {
    %c0_i32 = arith.constant 0 : i32
    %c0_i32_0 = arith.constant 0 : i32
    %c0_i32_1 = arith.constant 0 : i32
    return %c0_i32, %c0_i32_0 : i32, i32
  }
  func.func @transform_4(%arg0: i32, %arg1: i32) -> (i32, i32) {
    %c0_i32 = arith.constant 0 : i32
    %c0_i32_0 = arith.constant 0 : i32
    %c0_i32_1 = arith.constant 0 : i32
    return %c0_i32, %c0_i32_0 : i32, i32
  }
  func.func @transform_5(%arg0: i32, %arg1: i32) -> (i32, i32, i32, i32) {
    %c0_i32 = arith.constant 0 : i32
    %c0_i32_0 = arith.constant 0 : i32
    %c0_i32_1 = arith.constant 0 : i32
    return %arg0, %c0_i32, %arg1, %c0_i32_0 : i32, i32, i32, i32
  }
  func.func @transform_6(%arg0: i32, %arg1: i32) -> (i32, i32, i32, i32) {
    %c0_i32 = arith.constant 0 : i32
    %c0_i32_0 = arith.constant 0 : i32
    %c0_i32_1 = arith.constant 0 : i32
    return %arg0, %c0_i32, %arg1, %c0_i32_0 : i32, i32, i32, i32
  }
  func.func @transform_7(%arg0: i32, %arg1: i32) -> (i32, i32, i32, i32) {
    %c0_i32 = arith.constant 0 : i32
    %c0_i32_0 = arith.constant 0 : i32
    %c0_i32_1 = arith.constant 0 : i32
    return %arg0, %c0_i32, %arg1, %c0_i32_0 : i32, i32, i32, i32
  }
}

</mosaic_0001>

<bundles_post_ra>
// kernel: tpu_custom_call.1
= control target key start
LH: loop header
LB: loop body
LE: loop exit
PB: predicated region body
PF: predicated region fallthrough
CT: control target
= control target key end

     0   :  { %s1406_s0 = inlined_call_operand.hbm [shape: f32[2,16,32], index: 0, kind: input, shape index: {}]   ;;  %s1407_s1 = inlined_call_operand.hbm [shape: f32[1,32], index: 1, kind: input, shape index: {}]   ;;  %s1408_s2 = inlined_call_operand.vmem [shape: f32[1,32], index: 2, kind: input, shape index: {}]   ;;  %s1409_s3 = inlined_call_operand.hbm [shape: f32[32,96], index: 3, kind: input, shape index: {}]   ;;  %s1410_s4 = inlined_call_operand.vmem [shape: f32[1,96], index: 4, kind: input, shape index: {}]   ;;  %s1411_s5 = inlined_call_operand.vmem [shape: f32[2,4,16,8], index: 5, kind: output, shape index: {0}]   ;;  %s1412_s6 = inlined_call_operand.vmem [shape: f32[2,4,16,8], index: 6, kind: output, shape index: {1}]   ;;  %s1413_s7 = inlined_call_operand.vmem [shape: f32[2,4,16,8], index: 7, kind: output, shape index: {2}]  }
   0x1   :  { %1416 = sst [smem:[#allocation15_spill]] %s1407_s1 }
   0x2   :  { %1417 = sst [smem:[#allocation16_spill]] %s1409_s3 }
   0x3   :  { %1418 = sst [smem:[#allocation17_spill]] %s1411_s5 }
   0x4   :  { %1419 = sst [smem:[#allocation18_spill]] %s1412_s6 }
   0x5   :  { %1420 = sst [smem:[#allocation19_spill]] %s1413_s7 }
   0x6   :  { %13 = vsyncpa [#allocation3], 0 }
   0x7   :  { %15 = vsyncpa [#allocation3 + $0x1], 0 }
   0x8   :  { %16 = vsyncpa [#allocation5], 0  ;;  %s1180_s24 = smov 0   ;;  %s1182_s25 = smov 0  }
   0x9   :  { %s1184_s26 = smov 0   ;;  %s1186_s27 = smov 0  }
   0xa   :  { %s1188_s28 = smov 0   ;;  %s1190_s29 = smov 0  }
   0xb   :  { %s1192_s30 = smov 0   ;;  %s1194_s8 = smov 0  }
   0xc LB: > { %1421 = sst [smem:[#allocation12_spill]] %s1106_s27  ;;  %s812_s9 = sadd.s32 4294967295, %s1122_s8   ;;  %s1122_s8 = sphi %s1194_s8, %s22_s8   ;;  %s1118_s30 = sphi %s1192_s30, %s1446_s30   ;;  %s1114_s29 = sphi %s1190_s29, %s1445_s29   ;;  %s1110_s28 = sphi %s1188_s28, %s1444_s28   ;;  %s1106_s27 = sphi %s1186_s27, %s1443_s27   ;;  %s1102_s26 = sphi %s1184_s26, %s1442_s26   ;;  %s1098_s25 = sphi %s1182_s25, %s1441_s25   ;;  %s1094_s24 = sphi %s1180_s24, %s1440_s24  }
   0xd   : > { %p56_p0 = scmp.ne.s32.totalorder %s1098_s25, %s1094_s24  ;;  %p1220_p1 = scmp.eq.s32.totalorder %s812_s9, 0 }
   0xe   : > { %p1224_p2 = scmp.eq.s32.totalorder %s812_s9, 3  ;;  %p814_p3 = scmp.ge.s32.totalorder %s1122_s8, 1 }
   0xf   : > { %p235_p4 = scmp.lt.s32.totalorder %s1122_s8, 5  ;;  %p1232_p5 = por %p1220_p1, %p56_p0 }
  0x10   : > { %s1426_s1 = sld [smem:[#allocation15_spill]]  ;;  %s1124_s17 = smov [#allocation4]  }
  0x11   : > { %p1236_p6 = pnand %p814_p3, %p235_p4  ;;  %s249_s18 = sshll.u32 %s1124_s17, 4  ;;  %s250_s18 = int_to_ptr.vmem [resolvable:$true] %s249_s18 }
  0x12   : > { %s1427_s3 = sld [smem:[#allocation16_spill]]  ;;  %s1125_s22 = smov [#allocation6]  }
  0x13   : > { %p859_p7 = pneg %p1236_p6  ;;  %s263_s23 = sshll.u32 %s1125_s22, 4  ;;  %s264_s23 = int_to_ptr.vmem [resolvable:$true] %s263_s23 }
  0x14   : > { %s1126_s24 = smov 128   ;;  %s1127_s9 = smov 8  }
  0x15   : > { %p860_p8 = pnand %p859_p7, %p1220_p1  ;;  %s31_s14 = sadd.s32 1, %s1114_s29 }
  0x16   : > { %s247_s16 = sshll.u32 %s1426_s1, 4  ;;  %p32_p9 = scmp.ge.s32.totalorder %s31_s14, 2  ;;  %s248_s16 = int_to_ptr.hbm [resolvable:$true] %s247_s16 }
  0x17   : > { %862 = dma.hbm_to_vmem [thread:$0]  (!%p860_p8), %s248_s16, 16, %s250_s18, [#allocation5]  }
  0x18   : > { %s261_s21 = sshll.u32 %s1427_s3, 4  ;;  %s34_s15 = sadd.s32 1, %s1118_s30  ;;  %s262_s21 = int_to_ptr.hbm [resolvable:$true] %s261_s21 }
  0x19   : > { %865 = dma.hbm_to_vmem [thread:$0]  (!%p860_p8), %s262_s21, 512, %s264_s23, [#allocation5], %s1126_s24, %s1126_s24, %s1127_s9  }
  0x1a   : > { %s43_s17 = sadd.s32 1, %s1102_s26  ;;  %p50_p10 = scmp.ne.s32.totalorder %s1102_s26, %s1098_s25 }
  0x1b   : > { %s1448_s14 = smov (%p32_p9, %s31_s14), 0  ;;  %s1450_s15 = smov (!%p32_p9, %s34_s15), %s1118_s30 }
  0x1c   : > { %1428 = sst [smem:[#allocation13_spill]] %s1448_s14  ;;  %s39_s19 = ssub.s32 %s1114_s29, %s1448_s14 }
  0x1d   : > { %p51_p11 = scmp.eq.s32.totalorder %s1122_s8, 0  ;;  %p36_p12 = scmp.ge.s32.totalorder %s1450_s15, 2 }
  0x1e   : > { %p1263_p13 = por %p1224_p2, %p50_p10  ;;  %p872_p3 = scmp.lt.s32.totalorder %s1122_s8, 4 }
  0x1f   : > { %p1267_p0 = por %p51_p11, %p50_p10  ;;  %s1452_s15 = smov (%p36_p12, %s1450_s15), 0 }
  0x20   : > { %1431 = sst [smem:[#allocation14_spill]] %s1452_s15  ;;  %s280_s20 = sand.u32 1, %s1102_s26  }
  0x21   : > { %s819_s21 = sshll.u32 %s1118_s30, 1  ;;  %s38_s22 = ssub.s32 %s1118_s30, %s1452_s15 }
  0x22   : > { %s40_s23 = sor.u32 %s39_s19, %s38_s22  ;;  %s818_s24 = sshll.u32 %s280_s20, 3 }
  0x23   : > { %p41_p4 = scmp.eq.s32.totalorder %s40_s23, 0  ;;  %s288_s11 = sadd.s32 %s1114_s29, %s819_s21 }
  0x24   : > { %s284_s9 = scalar_lea.vmem [#allocation2], %s818_s24  ;;  %s820_s14 = sshll.u32 %s288_s11, 3 }
  0x25   : > { %s294_s1 = sshll.u32 %s284_s9, 4  ;;  %s290_s5 = scalar_lea.hbm %s1406_s0, %s820_s14  ;;  %s295_s1 = int_to_ptr.vmem [resolvable:$true] %s294_s1 }
  0x26   : > { %s1280_s3 = scalar_select %p41_p4, %s1102_s26, %s43_s17  }
  0x27   : > { %p867_p2 = pnand %p872_p3, %p1267_p0  ;;  %s292_s27 = sshll.u32 %s290_s5, 4  ;;  %s293_s27 = int_to_ptr.hbm [resolvable:$true] %s292_s27 }
  0x28   : > { %s281_s15 = scalar_lea.sflag [#allocation3], %s280_s20  ;;  %303 = sbr.rel (%p1236_p6) target bundleno = 621 (0x26d), region = 40 }
  0x29   : > { %869 = dma.hbm_to_vmem [thread:$0]  (!%p867_p2), %s293_s27, 128, %s295_s1, %s281_s15  }
  0x2a   : > { %s1292_s17 = sand.u32 (!%p1236_p6), 1, %s1098_s25  }
  0x2b   : > { %s822_s19 = sshll.u32 (!%p1236_p6), %s1292_s17, 3  ;;  %s306_s21 = scalar_lea.sflag (!%p1236_p6), [#allocation3], %s1292_s17 }
  0x2c   : > { %s309_s6 = scalar_lea.vmem (!%p1236_p6), [#allocation2], %s822_s19 }
  0x2d   : > { %1085 = dma.done.wait (%p1232_p5), %s306_s21, 128  }
  0x2e   : > { %1087 = vsyncadd (%p1232_p5), %s306_s21, 4294967168 }
  0x2f   : > { %1089 = dma.done.wait (%p1220_p1), [#allocation5], 528  }
  0x30   : > { %1091 = vsyncadd (%p1220_p1), [#allocation5], 4294966768  ;;  %vm361_vm0 = vcmask 261120   ;;  %v358_v0 = vld [vmem:[%s309_s6] sm:$0xff]  ;;  %v1128_v2 = vmov 32.0   ;;  %v399_v17 = vld [vmem:[#allocation6] sm:$0xff] }
  0x31   : > { %v362_v1 = vsel %vm361_vm0, %v358_v0, 0.0  ;;  %958 = vrcp.f32 %v1128_v2  ;;  %v402_v14 = vld [vmem:[#allocation6 + $0x18] sm:$0xff]  ;;  %v401_v15 = vld [vmem:[#allocation6 + $0x10] sm:$0xff]  ;;  %v400_v16 = vld [vmem:[#allocation6 + $0x8] sm:$0xff]  ;;  %s1314_s10 = sshll.u32 %s1292_s17, 5  ;;  %vm431_vm5 = vcmask 64512  }
  0x32   : > { %363 = vadd.xlane.f32.xlu0 %v362_v1  ;;  %422 = vmatpush.msra.mxu0 %v402_v14  ;;  %v955_v27 = vld [vmem:[#allocation4] ss:$0 sm:$0xff]  ;;  %v956_v30 = vld [vmem:[%s1408_s2] ss:$0 sm:$0xff]  ;;  %s1129_s12 = smov 56   ;;  %s1130_s13 = smov 88  }
  0x33   : > { %v957_v33 = vld [vmem:[%s1410_s4] ss:$0 sm:$0xff]  ;;  %s1131_s14 = smov 96   ;;  %s1317_s15 = scalar_lea.vmem [#allocation7], %s1314_s10 }
  0x34   : > { %423 = vmatpush.msra.mxu0 %v401_v15  ;;  %s1132_s18 = smov 80   ;;  %s1133_s20 = smov 64  }
  0x35   : > { %s1134_s22 = smov 120   ;;  %s1135_s23 = smov 48  }
  0x36   : > { %424 = vmatpush.msra.mxu0 %v400_v16  ;;  %s1136_s24 = smov 104   ;;  %s1137_s11 = smov 112  }
  0x37   : > { %v959_v3 = vpop.eup %958  ;;  %s1138_s9 = smov 40   ;;  %s1139_s17 = smov 72  }
  0x38   : > { %v366_v4 = vmul.f32 32.0, %v959_v3  ;;  %vm370_vm1 = vweird.f32 %v959_v3  ;;  %425 = vmatpush.msra.mxu0 %v399_v17  ;;  %s1322_s19 = scalar_lea.vmem [#allocation8], %s1314_s10  ;;  %s1331_s21 = scalar_lea.vmem [#allocation9], %s1314_s10 }
  0x39   : > { %s1432_s6 = sld [smem:[#allocation12_spill]] (%p1263_p13)  ;;  %s841_s1 = sshll.u32 (%p1263_p13), %s1110_s28, 3 }
  0x3a   : > { %v367_v5 = vsub.f32 1.0, %v366_v4 }
  0x3c   : > { %v368_v6 = vmul.f32 %v959_v3, %v367_v5 }
  0x3e   : > { %v369_v7 = vadd.f32 %v959_v3, %v368_v6 }
  0x3f   : > { %s504_s5 = sadd.s32 (%p1263_p13), %s1432_s6, %s841_s1 }
  0x40   : > { %v371_v8 = vsel %vm370_vm1, %v959_v3, %v369_v7  ;;  %s842_s7 = sshll.u32 (%p1263_p13), %s504_s5, 3 }
  0xa5   : > { %v364_v9 = vpop.xlane.xlu0 %363 }
  0xa6   : > { %v372_v10 = vmul.f32 %v371_v8, %v364_v9 }
  0xa8   : > { %v373_v11 = vsub.f32 %v358_v0, %v372_v10 }
  0xaa   : > { %v374_v12 = vmul.f32 %v373_v11, %v373_v11 }
  0xac   : > { %v375_v13 = vsel %vm361_vm0, %v374_v12, 0.0 }
  0xad   : > { %376 = vadd.xlane.f32.xlu0 %v375_v13 }
 0x120   : > { %v377_v18 = vpop.xlane.xlu0 %376 }
 0x121   : > { %v378_v19 = vmul.f32 %v377_v18, %v371_v8 }
 0x123   : > { %v379_v20 = vadd.f32 1e-05, %v378_v19 }
 0x125   : > { %960 = vrsqrt.f32 %v379_v20  ;;  %vm386_vm3 = vweird.f32 %v379_v20 }
 0x12b   : > { %v961_v21 = vpop.eup %960 }
 0x12c   : > { %v381_v22 = vmul.f32 %v961_v21, %v379_v20  ;;  %vm387_vm2 = vweird.f32 %v961_v21 }
 0x12d   : > { %vm388_vm4 = vmor %vm386_vm3, %vm387_vm2 }
 0x12e   : > { %v382_v23 = vmul.f32 %v961_v21, %v381_v22 }
 0x130   : > { %v383_v24 = vmul.f32 0.5, %v382_v23 }
 0x132   : > { %v384_v25 = vsub.f32 1.5, %v383_v24 }
 0x134   : > { %v385_v26 = vmul.f32 %v961_v21, %v384_v25 }
 0x136   : > { %v389_v28 = vsel %vm388_vm4, %v961_v21, %v385_v26 }
 0x137   : > { %v390_v29 = vmul.f32 %v389_v28, %v373_v11 }
 0x139   : > { %v394_v31 = vmul.f32 %v955_v27, %v390_v29 }
 0x13b   : > { %v398_v32 = vadd.f32 %v956_v30, %v394_v31 }
 0x13d   : > { %828 = vmatmul.msk.f32.vlgmr.msra.gmra.mxu0 %vm361_vm0, %v398_v32 }
 0x1ba   : > { %v427_v34 = vpop.f32.mrf.mxu0 }
 0x1bb   : > { %v428_v35 = vadd.f32 %v957_v33, %v427_v34 }
 0x1bd   : > { %453 = vrot.lane.b32.xlu0 %v428_v35, %s1129_s12  ;;  %448 = vrot.lane.b32.xlu2 %v428_v35, %s1130_s13  ;;  %v430_v36 = vmul.f32 0.35355338, %v428_v35  ;;  %s1433_s12 = sld [smem:[#allocation17_spill]] (%p1263_p13) }
 0x1be   : > { %434 = vrot.lane.b32.xlu1 %v428_v35, %s1131_s14 }
 0x1bf   : > { %432 = vst.msk [vmem:[%s1317_s15] sm:$0xff] %vm431_vm5, %v430_v36 }
 0x1c3   : > { %s506_s13 = scalar_lea.vmem (%p1263_p13), %s1433_s12, %s842_s7 }
 0x1c5   : > { %463 = vrot.lane.b32.xlu2 %v428_v35, %s1132_s18 }
 0x1c6   : > { %438 = vrot.lane.b32.xlu1 %v428_v35, %s1133_s20  ;;  %v541_v48 = vld [vmem:[%s1317_s15] sm:$0xff] (%p1263_p13) }
 0x1c7   : > { %542 = vst [vmem:[%s506_s13] sm:$0xff] (%p1263_p13), %v541_v48 }
 0x1cd   : > { %443 = vrot.lane.b32.xlu2 %v430_v36, %s1134_s22 }
 0x1ce   : > { %468 = vrot.lane.b32.xlu1 %v428_v35, %s1135_s23 }
 0x1d5   : > { %473 = vrot.lane.b32.xlu2 %v430_v36, %s1136_s24 }
 0x1d6   : > { %458 = vrot.lane.b32.xlu1 %v430_v36, %s1137_s11 }
 0x1dd   : > { %483 = vrot.lane.b32.xlu2 %v428_v35, %s1138_s9 }
 0x1de   : > { %478 = vrot.lane.b32.xlu1 %v428_v35, %s1139_s17 }
 0x217   : > { %v449_v37 = vpop.permute.xlu2 %448 }
 0x218   : > { %830 = vst.msk [vmem:[%s1322_s19 + $0x8] sm:$0xff] %vm431_vm5, %v449_v37 }
 0x21f   : > { %v464_v38 = vpop.permute.xlu2 %463 }
 0x220   : > { %833 = vst.msk [vmem:[%s1322_s19 + $0x10] sm:$0xff] %vm431_vm5, %v464_v38 }
 0x227   : > { %v444_v39 = vpop.permute.xlu2 %443 }
 0x228   : > { %829 = vst.msk [vmem:[%s1317_s15 + $0x8] sm:$0xff] %vm431_vm5, %v444_v39 }
 0x22f   : > { %v454_v40 = vpop.permute.xlu0 %453  ;;  %v474_v41 = vpop.permute.xlu2 %473  ;;  %v543_v49 = vld [vmem:[%s1317_s15 + $0x8] sm:$0xff] (%p1263_p13) }
 0x230   : > { %831 = vst.msk [vmem:[%s1331_s21 + $0x8] sm:$0xff] %vm431_vm5, %v454_v40  ;;  %v435_v42 = vpop.permute.xlu1 %434 }
 0x231   : > { %437 = vst.msk [vmem:[%s1322_s19] sm:$0xff] %vm431_vm5, %v435_v42 }
 0x232   : > { %835 = vst.msk [vmem:[%s1317_s15 + $0x18] sm:$0xff] %vm431_vm5, %v474_v41 }
 0x233   : > { %544 = vst [vmem:[%s506_s13 + $0x10] sm:$0xff] (%p1263_p13), %v543_v49 }
 0x237   : > { %v484_v43 = vpop.permute.xlu2 %483 }
 0x238   : > { %v439_v44 = vpop.permute.xlu1 %438  ;;  %837 = vst.msk [vmem:[%s1331_s21 + $0x18] sm:$0xff] %vm431_vm5, %v484_v43 }
 0x239   : > { %441 = vst.msk [vmem:[%s1331_s21] sm:$0xff] %vm431_vm5, %v439_v44  ;;  %v547_v51 = vld [vmem:[%s1317_s15 + $0x18] sm:$0xff] (%p1263_p13) }
 0x23a   : > { %548 = vst [vmem:[%s506_s13 + $0x30] sm:$0xff] (%p1263_p13), %v547_v51 }
 0x240   : > { %v469_v45 = vpop.permute.xlu1 %468 }
 0x241   : > { %834 = vst.msk [vmem:[%s1331_s21 + $0x10] sm:$0xff] %vm431_vm5, %v469_v45 }
 0x248   : > { %v459_v46 = vpop.permute.xlu1 %458 }
 0x249   : > { %832 = vst.msk [vmem:[%s1317_s15 + $0x10] sm:$0xff] %vm431_vm5, %v459_v46 }
 0x24d   : > { %502 = sbr.rel (!%p1263_p13) target bundleno = 595 (0x253), region = 56 }
 0x250   : > { %v479_v47 = vpop.permute.xlu1 %478  ;;  %v545_v50 = vld [vmem:[%s1317_s15 + $0x10] sm:$0xff] (%p1263_p13) }
 0x251   : > { %836 = vst.msk [vmem:[%s1322_s19 + $0x18] sm:$0xff] %vm431_vm5, %v479_v47 }
 0x252   : > { %546 = vst [vmem:[%s506_s13 + $0x20] sm:$0xff] %v545_v50 }
 0x253 PF: > { %554 = sbr.rel (!%p1263_p13) target bundleno = 608 (0x260), region = 94  ;;  %s1434_s14 = sld [smem:[#allocation12_spill]] (%p1263_p13)  ;;  %v593_v52 = vld [vmem:[%s1322_s19] sm:$0xff] (%p1263_p13)  ;;  %v595_v53 = vld [vmem:[%s1322_s19 + $0x8] sm:$0xff] (%p1263_p13)  ;;  %v597_v54 = vld [vmem:[%s1322_s19 + $0x10] sm:$0xff] (%p1263_p13) }
 0x254   : > { %s843_s18 = sshll.u32 (%p1263_p13), %s1110_s28, 3  ;;  %s1435_s24 = sld [smem:[#allocation18_spill]] (%p1263_p13) }
 0x259   : > { %s556_s20 = sadd.s32 %s1434_s14, %s843_s18  ;;  %v599_v55 = vld [vmem:[%s1322_s19 + $0x18] sm:$0xff] }
 0x25a   : > { %s844_s22 = sshll.u32 %s556_s20, 3 }
 0x25b   : > { %s558_s11 = scalar_lea.vmem %s1435_s24, %s844_s22 }
 0x25c   : > { %594 = vst [vmem:[%s558_s11] sm:$0xff] %v593_v52 }
 0x25d   : > { %596 = vst [vmem:[%s558_s11 + $0x10] sm:$0xff] %v595_v53 }
 0x25e   : > { %598 = vst [vmem:[%s558_s11 + $0x20] sm:$0xff] %v597_v54 }
 0x25f   : > { %600 = vst [vmem:[%s558_s11 + $0x30] sm:$0xff] %v599_v55 }
 0x260 PF: > { %606 = sbr.rel (!%p1263_p13) target bundleno = 621 (0x26d), region = 132  ;;  %s1436_s9 = sld [smem:[#allocation12_spill]] (%p1263_p13)  ;;  %v645_v56 = vld [vmem:[%s1331_s21] sm:$0xff] (%p1263_p13)  ;;  %v647_v57 = vld [vmem:[%s1331_s21 + $0x8] sm:$0xff] (%p1263_p13)  ;;  %v649_v58 = vld [vmem:[%s1331_s21 + $0x10] sm:$0xff] (%p1263_p13) }
 0x261   : > { %s845_s17 = sshll.u32 (%p1263_p13), %s1110_s28, 3  ;;  %s1437_s7 = sld [smem:[#allocation19_spill]] (%p1263_p13)  ;;  %v651_v59 = vld [vmem:[%s1331_s21 + $0x18] sm:$0xff] (%p1263_p13) }
 0x266   : > { %s608_s6 = sadd.s32 %s1436_s9, %s845_s17 }
 0x267   : > { %s846_s1 = sshll.u32 %s608_s6, 3 }
 0x268   : > { %s610_s27 = scalar_lea.vmem %s1437_s7, %s846_s1 }
 0x269   : > { %646 = vst [vmem:[%s610_s27] sm:$0xff] %v645_v56 }
 0x26a   : > { %648 = vst [vmem:[%s610_s27 + $0x10] sm:$0xff] %v647_v57 }
 0x26b   : > { %650 = vst [vmem:[%s610_s27 + $0x20] sm:$0xff] %v649_v58 }
 0x26c   : > { %652 = vst [vmem:[%s610_s27 + $0x30] sm:$0xff] %v651_v59 }
 0x26d PF: > { %s22_s8 = sadd.s32 1, %s1122_s8   ;;  %s1438_s16 = sld [smem:[#allocation13_spill]] }
 0x26e   : > { %p19_p1 = scmp.ge.s32.totalorder %s22_s8, 6   ;;  %s1439_s10 = sld [smem:[#allocation14_spill]] }
 0x26f   : > { %s1440_s24 = smov %s1098_s25  ;;  %s1441_s25 = smov %s1102_s26 }
 0x270   : > { %s1442_s26 = smov %s1280_s3  ;;  %s1443_s27 = smov %s1114_s29 }
 0x271   : > { %s1444_s28 = smov %s1118_s30  ;;  %21 = sbr.rel (!%p19_p1) target bundleno = 12 (0xc), region = 235 }
 0x273   : > { %s1445_s29 = smov %s1438_s16 }
 0x274   : > { %s1446_s30 = smov %s1439_s10 }
 0x276   :  { %682 = vsyncpa [#allocation3], 1 }
 0x277   :  { %684 = vsyncpa [#allocation3 + $0x1], 1 }
 0x278   :  { %685 = vsyncpa [#allocation5], 1 }

</bundles_post_ra>
